<compile_context>
chip_gen: v7x
topology: tpu7x:2x2x1
jax: 0.10.0
libtpu: 0.0.40
codegen_flags: <defaults>
</compile_context>

<pallas_src>
import math

import jax
import jax.numpy as jnp
from jax import lax
from jax.experimental import pallas as pl
from jax.experimental.pallas import tpu as pltpu

LANES = 128
SUBLANES = 8
SUB_ROWS = 64            # rows per inner fori_loop iteration (8 f32 vregs)
MAX_BLOCK_ROWS = 8192    # 8192*128*4B = 4 MiB per f32 input block
INNER_UNROLL = 8


def _round_up(x: int, m: int) -> int:
    return ((x + m - 1) // m) * m


def _choose_block_rows(rows: int, tile_rows: int) -> int:
    """Pick a block size that (a) caps VMEM use, (b) yields >=2 grid steps
    whenever possible (megacore on v7x), (c) is sublane/packing aligned."""
    if rows > MAX_BLOCK_ROWS:
        return MAX_BLOCK_ROWS
    if rows <= tile_rows:
        return rows                      # too small to split
    half = -(-rows // 2)                 # ceil(rows / 2)
    mult = SUB_ROWS if half >= SUB_ROWS else tile_rows
    return _round_up(half, mult)


def _make_charbonnier_kernel(eps: float, rows: int, block_rows: int,
                             needs_mask: bool):
    """Builds the per-block kernel. All closure values are Python scalars."""
    eps2 = float(eps) * float(eps)       # plain float -> lowered as a literal

    if block_rows % SUB_ROWS == 0 and block_rows > SUB_ROWS:
        chunk_rows = SUB_ROWS
    else:
        chunk_rows = block_rows          # small block: single shot
    nsub = block_rows // chunk_rows
    unroll = max(1, min(INNER_UNROLL, nsub))

    def _partial_sum(x_ref, y_ref, use_mask: bool):
        if use_mask:
            valid_rows = rows - pl.program_id(0) * block_rows

        def body(j, acc):
            r0 = pl.multiple_of(j * chunk_rows, chunk_rows)
            x = x_ref[pl.ds(r0, chunk_rows), :].astype(jnp.float32)
            y = y_ref[pl.ds(r0, chunk_rows), :].astype(jnp.float32)
            d = x - y
            val = jnp.sqrt(d * d + eps2)
            if use_mask:
                # Zero rows past the valid extent (select, so OOB garbage —
                # even NaN/Inf — never reaches the accumulator).
                row_ids = r0 + lax.broadcasted_iota(jnp.int32, val.shape, 0)
                val = jnp.where(row_ids < valid_rows, val, 0.0)
            return acc + val             # elementwise, 1 add/vreg per iter

        acc0 = jnp.zeros((chunk_rows, LANES), jnp.float32)
        acc = lax.fori_loop(0, nsub, body, acc0, unroll=unroll)
        # (chunk_rows,128) -> (8,128): tile-aligned reshape => pure VPU adds,
        # done once per grid step.
        return jnp.sum(acc.reshape(chunk_rows // SUBLANES, SUBLANES, LANES),
                       axis=0)

    def kernel(x_ref, y_ref, out_ref):
        if needs_mask:
            is_last = pl.program_id(0) == pl.num_programs(0) - 1

            @pl.when(jnp.logical_not(is_last))
            def _():
                out_ref[...] = _partial_sum(x_ref, y_ref, use_mask=False)

            @pl.when(is_last)
            def _():
                out_ref[...] = _partial_sum(x_ref, y_ref, use_mask=True)
        else:
            out_ref[...] = _partial_sum(x_ref, y_ref, use_mask=False)

    return kernel


def l1loss_charbonnier(x: jax.Array, ref: jax.Array,
                       eps: float = 0.001) -> jax.Array:
    """Charbonnier L1 loss = mean(sqrt((x - ref)^2 + eps^2)). Returns a 0-d f32."""
    assert x.shape == ref.shape, "input and ref must have identical shapes"
    n_real = math.prod(x.shape)
    eps_f = float(eps)
    eps2 = eps_f * eps_f

    xf = x.reshape(-1)
    yf = ref.reshape(-1)

    # Sublane-packing granularity: 8 rows for 32-bit, 16 for bf16, 32 for fp8.
    itemsize = min(xf.dtype.itemsize, yf.dtype.itemsize)
    packing = max(1, 4 // max(1, itemsize))
    tile_rows = SUBLANES * packing
    tile_elems = tile_rows * LANES

    # Bulk portion handled by the kernel; small tail summed in plain JAX.
    n_main = (n_real // tile_elems) * tile_elems
    tail = n_real - n_main

    total = jnp.float32(0.0)

    if n_main > 0:
        rows = n_main // LANES                      # multiple of tile_rows
        block_rows = _choose_block_rows(rows, tile_rows)
        grid = pl.cdiv(rows, block_rows)
        needs_mask = (rows % block_rows) != 0       # only the last block

        # TODO(synk): for ragged n_real the slice below can materialize one
        # extra copy of the bulk data; a pl.ANY + manual-DMA path would avoid
        # it (not needed for tile-aligned inputs, which take the no-copy path).
        x2 = (xf[:n_main] if tail else xf).reshape(rows, LANES)
        y2 = (yf[:n_main] if tail else yf).reshape(rows, LANES)

        kernel = _make_charbonnier_kernel(eps_f, rows, block_rows, needs_mask)

        in_bytes = block_rows * LANES * (xf.dtype.itemsize + yf.dtype.itemsize)
        vmem_limit = int(min(max(3 * in_bytes + (4 << 20), 16 << 20), 48 << 20))

        partials = pl.pallas_call(
            kernel,
            out_shape=jax.ShapeDtypeStruct((grid * SUBLANES, LANES),
                                           jnp.float32),
            grid_spec=pltpu.PrefetchScalarGridSpec(
                num_scalar_prefetch=0,
                grid=(grid,),
                in_specs=[
                    pl.BlockSpec((block_rows, LANES), lambda i: (i, 0)),
                    pl.BlockSpec((block_rows, LANES), lambda i: (i, 0)),
                ],
                out_specs=pl.BlockSpec((SUBLANES, LANES), lambda i: (i, 0)),
            ),
            compiler_params=pltpu.CompilerParams(
                dimension_semantics=("parallel",),
                vmem_limit_bytes=vmem_limit,
            ),
            cost_estimate=pl.CostEstimate(
                flops=3 * n_main,
                transcendentals=n_main,
                bytes_accessed=(n_main * (xf.dtype.itemsize + yf.dtype.itemsize)
                                + grid * SUBLANES * LANES * 4),
            ),
        )(x2, y2)

        total = total + jnp.sum(partials, dtype=jnp.float32)

    if tail:
        xt = xf[n_main:].astype(jnp.float32)
        yt = yf[n_main:].astype(jnp.float32)
        dt = xt - yt
        total = total + jnp.sum(jnp.sqrt(dt * dt + jnp.float32(eps2)))

    return total / jnp.float32(n_real)


if __name__ == "__main__":
    key = jax.random.PRNGKey(0)
    k1, k2 = jax.random.split(key)

    # Shapes consistent with a typical image-loss use of the module (NCHW).
    x = jax.random.normal(k1, (2, 4, 16, 16), dtype=jnp.float32)
    r = jax.random.normal(k2, (2, 4, 16, 16), dtype=jnp.float32)

    out = l1loss_charbonnier(x, r, eps=0.001)
    out = jax.block_until_ready(out)

    ref = jnp.mean(jnp.sqrt((x - r) ** 2 + jnp.float32(0.001) ** 2))
    assert jnp.allclose(out, ref, rtol=1e-6, atol=1e-6), (out, ref)

    # Also exercise the non-tile-multiple (JAX tail + masked last block) path.
    k3, k4 = jax.random.split(k2)
    x_odd = jax.random.normal(k3, (3, 3, 17, 19), dtype=jnp.float32)
    r_odd = jax.random.normal(k4, (3, 3, 17, 19), dtype=jnp.float32)
    out_odd = jax.block_until_ready(l1loss_charbonnier(x_odd, r_odd, eps=0.001))
    ref_odd = jnp.mean(jnp.sqrt((x_odd - r_odd) ** 2 + jnp.float32(0.001) ** 2))
    assert jnp.allclose(out_odd, ref_odd, rtol=1e-6, atol=1e-6), (out_odd, ref_odd)

    print("KERNEL_OK")
</pallas_src>

<mosaic_0001>
module attributes {stable_mosaic.version = 11 : i64} {
  func.func @kernel(%arg0: i32, %arg1: memref<8x128xf32, #tpu.memory_space<vmem>>, %arg2: memref<8x128xf32, #tpu.memory_space<vmem>>, %arg3: memref<8x128xf32, #tpu.memory_space<vmem>>) attributes {dimension_semantics = [#tpu.dimension_semantics<parallel>], iteration_bounds = array<i64: 2>, scalar_prefetch = 0 : i64, scratch_operands = 0 : i64, tpu.core_type = #tpu.core_type<tc>, window_params = [{transform_indices = @transform_0, window_bounds = array<i64: 8, 128>}, {transform_indices = @transform_1, window_bounds = array<i64: 8, 128>}, {transform_indices = @transform_2, window_bounds = array<i64: 8, 128>}]} {
    %cst = arith.constant 0.000000e+00 : f32
    %0 = vector.broadcast %cst : f32 to vector<8x128xf32>
    %c0_i32 = arith.constant 0 : i32
    %c8_i32 = arith.constant 8 : i32
    %1 = arith.muli %c0_i32, %c8_i32 : i32
    %2 = tpu.assume_multiple %1, 8 : i32
    %3 = arith.index_cast %2 : i32 to index
    %c0 = arith.constant 0 : index
    %4 = vector.load %arg1[%3, %c0] : memref<8x128xf32, #tpu.memory_space<vmem>>, vector<8x128xf32>
    %5 = arith.index_cast %2 : i32 to index
    %c0_0 = arith.constant 0 : index
    %6 = vector.load %arg2[%5, %c0_0] : memref<8x128xf32, #tpu.memory_space<vmem>>, vector<8x128xf32>
    %7 = arith.subf %4, %6 : vector<8x128xf32>
    %8 = arith.mulf %7, %7 : vector<8x128xf32>
    %cst_1 = arith.constant 9.99999997E-7 : f32
    %9 = vector.broadcast %cst_1 : f32 to vector<8x128xf32>
    %10 = arith.addf %8, %9 : vector<8x128xf32>
    %11 = math.sqrt %10 : vector<8x128xf32>
    %12 = arith.addf %0, %11 : vector<8x128xf32>
    %c1_i32 = arith.constant 1 : i32
    %13 = vector.shape_cast %12 : vector<8x128xf32> to vector<1x8x128xf32>
    %cst_2 = arith.constant dense<0.000000e+00> : vector<8x128xf32>
    %14 = vector.multi_reduction <add>, %13, %cst_2 [0] : vector<1x8x128xf32> to vector<8x128xf32>
    %c0_3 = arith.constant 0 : index
    %c0_4 = arith.constant 0 : index
    %15 = vector.load %arg3[%c0_3, %c0_4] : memref<8x128xf32, #tpu.memory_space<vmem>>, vector<8x128xf32>
    tpu.vector_store %arg3[%c0_3, %c0_4], %14 {strides = array<i32>} : memref<8x128xf32, #tpu.memory_space<vmem>>, vector<8x128xf32>,
    return
  }
  func.func @transform_0(%arg0: i32) -> (i32, i32) {
    %c0_i32 = arith.constant 0 : i32
    %c0_i32_0 = arith.constant 0 : i32
    return %arg0, %c0_i32 : i32, i32
  }
  func.func @transform_1(%arg0: i32) -> (i32, i32) {
    %c0_i32 = arith.constant 0 : i32
    %c0_i32_0 = arith.constant 0 : i32
    return %arg0, %c0_i32 : i32, i32
  }
  func.func @transform_2(%arg0: i32) -> (i32, i32) {
    %c0_i32 = arith.constant 0 : i32
    %c0_i32_0 = arith.constant 0 : i32
    return %arg0, %c0_i32 : i32, i32
  }
}

</mosaic_0001>

<bundles_post_ra>
// kernel: tpu_custom_call.1
= control target key start
LH: loop header
LB: loop body
LE: loop exit
PB: predicated region body
PF: predicated region fallthrough
CT: control target
= control target key end

     0   :  { %7 = vsyncpa [#allocation3], 0  ;;  %s745_s0 = inlined_call_operand.hbm [shape: f32[16,128], index: 0, kind: input, shape index: {}]   ;;  %s746_s1 = inlined_call_operand.hbm [shape: f32[16,128], index: 1, kind: input, shape index: {}]   ;;  %s747_s2 = inlined_call_operand.hbm [shape: f32[16,128], index: 2, kind: output, shape index: {}]  }
   0x1   :  { %9 = vsyncpa [#allocation3 + $0x1], 0 }
   0x2   :  { %10 = vsyncpa [#allocation6], 0 }
   0x3   :  { %12 = vsyncpa [#allocation6 + $0x1], 0 }
   0x4   :  { %13 = vsyncpa [#allocation4], 0 }
   0x5   :  { %15 = vsyncpa [#allocation4 + $0x1], 0  ;;  %s536_s9 = smov 0   ;;  %s538_s10 = smov 0  }
   0x6   :  { %s540_s11 = smov 0   ;;  %s542_s12 = smov 0  }
   0x7 LB: > { %s557_s13 = sadd.s32 4294967295, %s516_s12   ;;  %s318_s14 = sadd.s32 4294967294, %s516_s12   ;;  %s516_s12 = sphi %s542_s12, %s766_s12   ;;  %s512_s11 = sphi %s540_s11, %s765_s11   ;;  %s508_s10 = sphi %s538_s10, %s764_s10   ;;  %s504_s9 = sphi %s536_s9, %s763_s9  }
   0x8   : > { %s561_s15 = sadd.s32 1, %s516_s12   ;;  %s28_s16 = sadd.s32 1, %s512_s11 }
   0x9   : > { %s25_s17 = ssub.s32 %s516_s12, %s561_s15  ;;  %p35_p0 = scmp.ne.s32.totalorder %s512_s11, %s508_s10 }
   0xa   : > { %p26_p1 = scmp.eq.s32.totalorder %s25_s17, 0  ;;  %p36_p2 = scmp.eq.s32.totalorder %s516_s12, 0 }
   0xb   : > { %p41_p3 = scmp.ne.s32.totalorder %s508_s10, %s504_s9  ;;  %p42_p4 = scmp.eq.s32.totalorder %s557_s13, 0 }
   0xc   : > { %s573_s18 = scalar_select %p26_p1, %s512_s11, %s28_s16  }
   0xd   : > { %p575_p5 = por %p36_p2, %p35_p0  ;;  %p579_p6 = por %p42_p4, %p41_p3 }
   0xe   : > { %p91_p7 = scmp.eq.s32.totalorder %s557_s13, 1  ;;  %p97_p8 = scmp.eq.s32.totalorder %s318_s14, 1 }
   0xf   : > { %s751_s20 = scalar_select %p579_p6, 1, 0 }
  0x10   : > { %p350_p10 = scmp.lt.s32.totalorder %s516_s12, 2  ;;  %p586_p11 = por %p91_p7, %p35_p0 }
  0x11   : > { %p590_p12 = por %p97_p8, %p41_p3  ;;  %s595_s23 = sand.u32 1, %s512_s11  }
  0x12   : > { %s752_s21 = scalar_select %p586_p11, 1, 0 }
  0x13   : > { %s753_s22 = scalar_select %p590_p12, 1, 0 }
  0x14   : > { %s322_s24 = sshll.u32 %s516_s12, 7  ;;  %s321_s25 = sshll.u32 %s595_s23, 3 }
  0x15   : > { %s604_s28 = scalar_lea.hbm %s745_s0, %s322_s24  ;;  %s121_s29 = scalar_lea.vmem [#allocation2], %s321_s25 }
  0x16   : > { %s128_s30 = sshll.u32 %s121_s29, 4  ;;  %p610_p13 = pnand %p350_p10, %p575_p5  ;;  %s614_s30 = int_to_ptr.vmem [resolvable:$true] %s128_s30 }
  0x17   : > { %s118_s4 = scalar_lea.sflag [#allocation3], %s595_s23  ;;  %s386_s5 = scalar_lea.hbm %s604_s28, 128 }
  0x18   : > { %p387_p2 = scmp.ne.s32.totalorder %s604_s28, %s386_s5  ;;  %p388_p3 = pneg %p610_p13 }
  0x19   : > { %s391_s8 = scalar_lea.hbm %s745_s0, 256  ;;  %p392_p5 = scmp.lt.u32.totalorder %s604_s28, %s745_s0 }
  0x1a   : > { %p389_p4 = pnand %p388_p3, %p387_p2  ;;  %p393_p8 = scmp.lt.u32.totalorder %s391_s8, %s386_s5 }
  0x1b   : > { %p395_p9 = scmp.lt.u32.totalorder %s386_s5, %s604_s28 }
  0x1c   : > { %p390_p7 = pneg %p389_p4  ;;  %p394_p10 = por %p393_p8, %p392_p5 }
  0x1e   : > { %p396_p0 = por %p395_p9, %p394_p10 }
  0x20   : > { %p397_p1 = pnand %p396_p0, %p390_p7 }
  0x22   : > { %400 = shalt.err (!%p397_p1)
}
  0x23   : > { %s401_s17 = scalar_lea.vmem %s614_s30, 128  ;;  %s518_s19 = smov [#allocation2]  }
  0x24   : > { %p402_p2 = scmp.ne.s32.totalorder %s614_s30, %s401_s17  ;;  %s406_s26 = sshll.u32 %s518_s19, 4  ;;  %s407_s26 = int_to_ptr.vmem [resolvable:$false] %s406_s26 }
  0x25   : > { %s408_s27 = scalar_lea.vmem %s407_s26, 256  ;;  %p409_p11 = scmp.lt.s32.totalorder %s614_s30, %s407_s26 }
  0x26   : > { %p404_p4 = pnand %p402_p2, %p388_p3  ;;  %p410_p5 = scmp.lt.s32.totalorder %s408_s27, %s401_s17 }
  0x28   : > { %p405_p12 = pneg %p404_p4  ;;  %p411_p8 = por %p410_p5, %p409_p11 }
  0x2a   : > { %p412_p9 = pnand %p411_p8, %p405_p12 }
  0x2c   : > { %415 = shalt.err (!%p412_p9)
}
  0x2d   : > { %342 = dma.hbm_to_vmem [thread:$0]  (!%p610_p13), %s604_s28, 128, %s614_s30, %s118_s4  }
  0x2e   : > { %p755_p0 = scmp.lt.s32.totalorder %s516_s12, 3  ;;  %p756_p1 = scmp.ge.s32.totalorder %s516_s12, 1 }
  0x2f   : > { %s657_s7 = scalar_lea.hbm %s746_s1, %s322_s24  ;;  %s139_s8 = scalar_lea.vmem [#allocation5], %s321_s25 }
  0x30   : > { %p648_p7 = pnand %p756_p1, %p755_p0  ;;  %s146_s14 = sshll.u32 %s139_s8, 4  ;;  %s147_s14 = int_to_ptr.vmem [resolvable:$true] %s146_s14 }
  0x31   : > { %s136_s28 = scalar_lea.sflag [#allocation6], %s595_s23  ;;  %s416_s30 = scalar_lea.hbm %s657_s7, 128 }
  0x32   : > { %s757_s29 = scalar_select %p648_p7, 1, 0 }
  0x33   : > { %p417_p11 = scmp.ne.s32.totalorder %s657_s7, %s416_s30  ;;  %s421_s24 = scalar_lea.hbm %s746_s1, 256 }
  0x34   : > { %p422_p2 = scmp.lt.u32.totalorder %s657_s7, %s746_s1  ;;  %p423_p4 = scmp.lt.u32.totalorder %s421_s24, %s416_s30 }
  0x35   : > { %p419_p12 = pnand %p417_p11, %p388_p3  ;;  %p425_p8 = scmp.lt.u32.totalorder %s416_s30, %s657_s7 }
  0x36   : > { %p424_p5 = por %p423_p4, %p422_p2 }
  0x37   : > { %p420_p10 = pneg %p419_p12 }
  0x38   : > { %p426_p9 = por %p425_p8, %p424_p5 }
  0x3a   : > { %p427_p0 = pnand %p426_p9, %p420_p10 }
  0x3c   : > { %430 = shalt.err (!%p427_p0)
}
  0x3d   : > { %s431_s23 = scalar_lea.vmem %s147_s14, 128  ;;  %s519_s25 = smov [#allocation5]  }
  0x3e   : > { %p432_p1 = scmp.ne.s32.totalorder %s147_s14, %s431_s23  ;;  %s436_s26 = sshll.u32 %s519_s25, 4  ;;  %s437_s26 = int_to_ptr.vmem [resolvable:$false] %s436_s26 }
  0x3f   : > { %s438_s27 = scalar_lea.vmem %s437_s26, 256  ;;  %p439_p6 = scmp.lt.s32.totalorder %s147_s14, %s437_s26 }
  0x40   : > { %p434_p11 = pnand %p432_p1, %p388_p3  ;;  %p440_p7 = scmp.lt.s32.totalorder %s438_s27, %s431_s23 }
  0x42   : > { %p435_p12 = pneg %p434_p11  ;;  %p441_p2 = por %p440_p7, %p439_p6 }
  0x44   : > { %p442_p4 = pnand %p441_p2, %p435_p12 }
  0x46   : > { %445 = shalt.err (!%p442_p4)
}
  0x47   : > { %345 = dma.hbm_to_vmem [thread:$0]  (!%p610_p13), %s657_s7, 128, %s147_s14, %s136_s28  }
  0x48   : > { %p758_p10 = scmp.ne.s32.totalorder %s757_s29, 0 }
  0x49   : > { %s684_s5 = sand.u32 (!%p758_p10), 1, %s508_s10   ;;  %p759_p3 = scmp.ne.s32.totalorder (!%p758_p10), %s751_s20, 0 }
  0x4a   : > { %155 = sbr.rel (%p758_p10) target bundleno = 120 (0x78), region = 28  ;;  %s326_s6 = sshll.u32 (!%p758_p10), %s684_s5, 3 }
  0x4b   : > { %s158_s8 = scalar_lea.sflag (!%p758_p10), [#allocation3], %s684_s5  ;;  %s161_s30 = scalar_lea.vmem (!%p758_p10), [#allocation2], %s326_s6 }
  0x51   : > { %491 = dma.done.wait (%p759_p3), %s158_s8, 128  }
  0x52   : > { %493 = vsyncadd (%p759_p3), %s158_s8, 4294967168  ;;  %s167_s3 = scalar_lea.sflag [#allocation6], %s684_s5  ;;  %s170_s7 = scalar_lea.vmem [#allocation5], %s326_s6 }
  0x53   : > { %495 = dma.done.wait (%p759_p3), %s167_s3, 128  }
  0x54   : > { %497 = vsyncadd (%p759_p3), %s167_s3, 4294967168  ;;  %v196_v0 = vld [vmem:[%s161_s30] sm:$0xff]  ;;  %v197_v1 = vld [vmem:[%s170_s7] sm:$0xff]  ;;  %s195_s29 = scalar_lea.vmem [#allocation7], %s326_s6  ;;  %s330_s28 = sshll.u32 %s557_s13, 7 }
  0x55   : > { %v198_v2 = vsub.f32 %v196_v0, %v197_v1  ;;  %s225_s14 = sshll.u32 %s195_s29, 4  ;;  %s703_s16 = scalar_lea.hbm %s747_s2, %s330_s28  ;;  %s698_s14 = int_to_ptr.vmem [resolvable:$true] %s225_s14 }
  0x56   : > { %s212_s24 = scalar_lea.sflag [#allocation4], %s684_s5  ;;  %s446_s17 = scalar_lea.vmem %s698_s14, 128 }
  0x57   : > { %v199_v3 = vmul.f32 %v198_v2, %v198_v2  ;;  %p447_p6 = scmp.ne.s32.totalorder %s698_s14, %s446_s17  ;;  %p760_p13 = scmp.ne.s32.totalorder %s752_s21, 0 }
  0x58   : > { %s520_s13 = smov [#allocation7]  }
  0x59   : > { %v200_v4 = vadd.f32 1e-06, %v199_v3  ;;  %p448_p7 = pnand %p447_p6, %p760_p13  ;;  %s450_s19 = sshll.u32 %s520_s13, 4  ;;  %s451_s19 = int_to_ptr.vmem [resolvable:$false] %s450_s19 }
  0x5a   : > { %s452_s23 = scalar_lea.vmem %s451_s19, 256  ;;  %p453_p8 = scmp.lt.s32.totalorder %s698_s14, %s451_s19 }
  0x5b   : > { %384 = vrsqrt.f32 %v200_v4  ;;  %vm203_vm0 = vcmp.eq.f32.partialorder %v200_v4, inf  ;;  %v206_v6 = vand.u32 2147483648, %v200_v4  ;;  %vm205_vm1 = vcmp.eq.f32.partialorder %v200_v4, 0.0  ;;  %p449_p5 = pneg %p448_p7  ;;  %p454_p9 = scmp.lt.s32.totalorder %s452_s23, %s446_s17 }
  0x5d   : > { %p455_p0 = por %p454_p9, %p453_p8 }
  0x5f   : > { %p456_p1 = pnand %p455_p0, %p449_p5 }
  0x65   : > { %v385_v5 = vpop.eup %384 }
  0x66   : > { %v202_v7 = vmul.f32 %v385_v5, %v200_v4 }
  0x68   : > { %v204_v8 = vsel %vm203_vm0, %v200_v4, %v202_v7 }
  0x69   : > { %v207_v9 = vsel %vm205_vm1, %v206_v6, %v204_v8 }
  0x6a   : > { %210 = vst [vmem:[%s195_s29] sm:$0xff] %v207_v9 }
  0x6b   : > { %459 = shalt.err (!%p456_p1)
}
  0x6c   : > { %s460_s25 = scalar_lea.hbm %s703_s16, 128  ;;  %s464_s5 = scalar_lea.hbm %s747_s2, 256 }
  0x6d   : > { %p461_p11 = scmp.ne.s32.totalorder %s703_s16, %s460_s25  ;;  %p465_p4 = scmp.lt.u32.totalorder %s703_s16, %s747_s2 }
  0x6e   : > { %p466_p10 = scmp.lt.u32.totalorder %s464_s5, %s460_s25  ;;  %p468_p6 = scmp.lt.u32.totalorder %s460_s25, %s703_s16 }
  0x6f   : > { %p462_p12 = pnand %p461_p11, %p760_p13 }
  0x70   : > { %p467_p3 = por %p466_p10, %p465_p4 }
  0x71   : > { %p463_p2 = pneg %p462_p12 }
  0x72   : > { %p469_p7 = por %p468_p6, %p467_p3 }
  0x74   : > { %p470_p5 = pnand %p469_p7, %p463_p2 }
  0x76   : > { %473 = shalt.err (!%p470_p5)
}
  0x77   : > { %337 = dma.vmem_to_hbm [thread:$0]  (%p760_p13), %s698_s14, 128, %s703_s16, %s212_s24  }
  0x78 PF: > { %s237_s30 = sand.u32 1, %s504_s9   ;;  %p761_p8 = scmp.ne.s32.totalorder %s753_s22, 0 }
  0x79   : > { %p762_p9 = scmp.ge.s32.totalorder %s516_s12, 2  ;;  %s238_s3 = scalar_lea.sflag [#allocation4], %s237_s30 }
  0x7b   : > { %p347_p0 = pnand %p762_p9, %p761_p8 }
  0x7d   : > { %499 = dma.done.wait (!%p347_p0), %s238_s3, 128  }
  0x7e   : > { %501 = vsyncadd (!%p347_p0), %s238_s3, 4294967168  ;;  %p18_p1 = scmp.ge.s32.totalorder %s561_s15, 4   ;;  %s763_s9 = smov %s508_s10 }
  0x7f   : > { %s764_s10 = smov %s512_s11  ;;  %s765_s11 = smov %s573_s18 }
  0x80   : > { %s766_s12 = smov %s561_s15  ;;  %20 = sbr.rel (!%p18_p1) target bundleno = 7 (0x7), region = 86 }
  0x87   :  { %243 = vsyncpa [#allocation3], 1 }
  0x88   :  { %245 = vsyncpa [#allocation3 + $0x1], 1 }
  0x89   :  { %246 = vsyncpa [#allocation6], 1 }
  0x8a   :  { %248 = vsyncpa [#allocation6 + $0x1], 1 }
  0x8b   :  { %249 = vsyncpa [#allocation4], 1 }
  0x8c   :  { %251 = vsyncpa [#allocation4 + $0x1], 1 }

</bundles_post_ra>
